<compile_context>
chip_gen: v7x
topology: tpu7x:2x2x1
jax: 0.10.0
libtpu: 0.0.40
codegen_flags: <defaults>
</compile_context>

<pallas_src>
import functools

import jax
import jax.numpy as jnp
from jax.experimental import pallas as pl
from jax.experimental.pallas import tpu as pltpu

LANE_PAD = 128  # pad the tiny hidden dims (5, 5) up to one full lane width


def _round_up(x, m):
    return ((x + m - 1) // m) * m


def _mlp_kernel(x_ref, w1_ref, b1_ref, w2_ref, b2_ref, w3_ref, b3_ref, o_ref):
    """One batch tile of the 3-layer MLP.

    x_ref  : (TILE_B, input_size) f32   -- streamed per tile
    w1_ref : (input_size, 128)   bf16   -- zero-padded, VMEM resident
    w2_ref : (128, 128)          bf16   -- zero-padded, VMEM resident
    b1/b2  : (1, 128)            f32    -- zero-padded
    w3_ref : (1, 128)            f32    -- fc3 weights transposed into a lane row
    b3_ref : (1, 1)              f32
    o_ref  : (TILE_B, 1)         f32    -- logits (narrow writeback)
    """
    # Cast to bf16 on the VPU (free next to MXU/DMA work); accumulate in f32.
    x = x_ref[...].astype(jnp.bfloat16)

    # fc1 + ReLU
    h1 = jnp.dot(x, w1_ref[...], preferred_element_type=jnp.float32) + b1_ref[...]
    h1 = jnp.maximum(h1, 0.0)

    # fc2 + ReLU
    h2 = jnp.dot(h1.astype(jnp.bfloat16), w2_ref[...],
                 preferred_element_type=jnp.float32) + b2_ref[...]
    h2 = jnp.maximum(h2, 0.0)

    # fc3: only one output column, so skip the MXU -- VPU multiply + cross-lane
    # sum (XLU) gives the (TILE_B, 1) logits directly, lane-narrow on purpose.
    logits = jnp.sum(h2 * w3_ref[...], axis=-1, keepdims=True) + b3_ref[...]
    o_ref[...] = logits.astype(o_ref.dtype)


def init_discriminator_params(key, input_size, hidden_size1=5, hidden_size2=5,
                              include_class=False):
    """Mirrors nn.Linear's U(-1/sqrt(fan_in), +1/sqrt(fan_in)) init. Natural shapes."""
    if include_class:
        input_size += 1
    k = jax.random.split(key, 6)

    def lin(kw, kb, fan_in, fan_out):
        bound = 1.0 / jnp.sqrt(jnp.float32(fan_in))
        w = jax.random.uniform(kw, (fan_in, fan_out), jnp.float32, -bound, bound)
        b = jax.random.uniform(kb, (1, fan_out), jnp.float32, -bound, bound)
        return w, b

    w1, b1 = lin(k[0], k[1], input_size, hidden_size1)
    w2, b2 = lin(k[2], k[3], hidden_size1, hidden_size2)
    w3, b3 = lin(k[4], k[5], hidden_size2, 1)
    return {"w1": w1, "b1": b1, "w2": w2, "b2": b2, "w3": w3, "b3": b3}


def pack_discriminator_params(params, lane_pad=LANE_PAD):
    """Zero-pad the tiny hidden dims to `lane_pad`; w1/w2 -> bf16, fc3 -> f32 row.

    Call once outside the hot loop. The padding is mathematically a no-op:
    ReLU(0*x + 0) = 0 and zero rows/columns contribute nothing.
    """
    hp = lane_pad
    in_size = params["w1"].shape[0]

    def pad_w_bf16(w, rows, cols):
        z = jnp.zeros((rows, cols), jnp.bfloat16)
        return z.at[: w.shape[0], : w.shape[1]].set(w.astype(jnp.bfloat16))

    def pad_b(b, cols):
        z = jnp.zeros((1, cols), jnp.float32)
        return z.at[:, : b.shape[1]].set(b.astype(jnp.float32))

    w3_row = jnp.zeros((1, hp), jnp.float32)
    w3_row = w3_row.at[:, : params["w3"].shape[0]].set(
        params["w3"].astype(jnp.float32).T)

    return {
        "w1": pad_w_bf16(params["w1"], in_size, hp),
        "b1": pad_b(params["b1"], hp),
        "w2": pad_w_bf16(params["w2"], hp, hp),
        "b2": pad_b(params["b2"], hp),
        "w3_row": w3_row,                                   # (1, hp) f32
        "b3": params["b3"].astype(jnp.float32).reshape(1, 1),
    }


@functools.partial(jax.jit, static_argnames=("tile_b",))
def discriminator_forward(x, packed, tile_b=2048):
    """Forward pass. x: (B, input_size) f32; packed: pack_discriminator_params output.

    Returns (B, 1) float32 logits (no sigmoid -- matches the torch forward).
    """
    B, in_size = x.shape
    hp = packed["w1"].shape[1]

    # Batch tile: large for HBM-stream efficiency, but no larger than ceil(B/2)
    # (rounded to 8 sublanes) so >=2 grid steps exist whenever B > 8 and both
    # TensorCores get work on v7x. Ragged final blocks are handled by Pallas
    # boundary blocks (masked stores), so no wrapper-side padding of x.
    half = _round_up(max(-(-B // 2), 1), 8)
    tb = _round_up(max(8, min(tile_b, half)), 8)
    grid = (pl.cdiv(B, tb),)

    # Advisory cost hint for XLA's scheduler.
    flops = 2 * B * (in_size * hp + hp * hp) + 3 * B * hp
    bytes_accessed = (B * in_size * 4                      # x (f32, streamed)
                      + (in_size * hp + hp * hp) * 2       # w1,w2 (bf16, resident)
                      + (3 * hp + 1) * 4                   # biases + fc3 row (f32)
                      + B * 4)                             # narrow f32 logits

    # Real per-call VMEM footprint (double-buffered x/out tiles, resident
    # weights, f32/bf16 intermediates); request ~4x with a small floor instead
    # of force-reserving 32 MiB (matters on v7x's 64 MiB VMEM).
    vmem_need = (2 * tb * in_size * 4 + tb * in_size * 2
                 + 2 * tb * hp * 4 + 2 * tb * hp * 2
                 + (in_size * hp + hp * hp) * 2 + (3 * hp + 1) * 4
                 + 2 * tb * 4)
    vmem_limit = int(min(max(4 * vmem_need, 4 << 20), 32 << 20))

    const = lambda i: (0, 0)  # noqa: E731  -- weights/biases stay VMEM-resident
    out = pl.pallas_call(
        _mlp_kernel,
        out_shape=jax.ShapeDtypeStruct((B, 1), jnp.float32),
        grid=grid,
        in_specs=[
            pl.BlockSpec((tb, in_size), lambda i: (i, 0)),   # x: streamed per tile
            pl.BlockSpec((in_size, hp), const),              # w1
            pl.BlockSpec((1, hp), const),                    # b1
            pl.BlockSpec((hp, hp), const),                   # w2
            pl.BlockSpec((1, hp), const),                    # b2
            pl.BlockSpec((1, hp), const),                    # w3 row
            pl.BlockSpec((1, 1), const),                     # b3
        ],
        out_specs=pl.BlockSpec((tb, 1), lambda i: (i, 0)),
        compiler_params=pltpu.CompilerParams(
            dimension_semantics=("parallel",),               # shard batch across TCs
            vmem_limit_bytes=vmem_limit,
        ),
        cost_estimate=pl.CostEstimate(
            flops=flops, transcendentals=0, bytes_accessed=bytes_accessed),
    )(x, packed["w1"], packed["b1"], packed["w2"], packed["b2"],
      packed["w3_row"], packed["b3"])
    return out


def _reference_forward_matched(x, p):
    """Pure-JAX reference in matching precision (bf16 matmul operands, f32 accum)."""
    bf = jnp.bfloat16
    h1 = jnp.maximum(
        jnp.dot(x.astype(bf), p["w1"].astype(bf),
                preferred_element_type=jnp.float32) + p["b1"], 0.0)
    h2 = jnp.maximum(
        jnp.dot(h1.astype(bf), p["w2"].astype(bf),
                preferred_element_type=jnp.float32) + p["b2"], 0.0)
    return h2 @ p["w3"].astype(jnp.float32) + p["b3"]


def _reference_forward_f32(x, p):
    h1 = jnp.maximum(x @ p["w1"] + p["b1"], 0.0)
    h2 = jnp.maximum(h1 @ p["w2"] + p["b2"], 0.0)
    return h2 @ p["w3"] + p["b3"]


if __name__ == "__main__":
    key = jax.random.PRNGKey(0)
    kx, kp = jax.random.split(key)

    input_size = 16
    params = init_discriminator_params(kp, input_size, hidden_size1=5,
                                       hidden_size2=5, include_class=False)
    packed = pack_discriminator_params(params)   # one-time pad + cast

    # Even batch: two full 192-row tiles (>=2 grid steps -> both TCs on v7x).
    batch = 384
    x = jax.random.normal(kx, (batch, input_size), jnp.float32)
    out = jax.block_until_ready(discriminator_forward(x, packed))
    assert out.shape == (batch, 1)
    assert jnp.allclose(out, _reference_forward_matched(x, params),
                        atol=1e-3, rtol=1e-3), "mismatch vs matched-precision ref"
    assert jnp.allclose(out, _reference_forward_f32(x, params),
                        atol=5e-2, rtol=5e-2), "mismatch vs f32 reference"

    # Ragged batch (not a tile multiple): exercises masked boundary blocks.
    x2 = x[:100]
    out2 = jax.block_until_ready(discriminator_forward(x2, packed))
    assert out2.shape == (100, 1)
    assert jnp.allclose(out2, _reference_forward_matched(x2, params),
                        atol=1e-3, rtol=1e-3), "ragged-batch mismatch"

    # TODO(synk): the torch `train` method (BCEWithLogitsLoss + Adam loop with MPS
    # generator sampling) is host-side training logic, not part of the forward kernel.
    print("KERNEL_OK")
</pallas_src>

<mosaic_0001>
module attributes {stable_mosaic.version = 11 : i64} {
  func.func @_mlp_kernel(%arg0: i32, %arg1: memref<192x16xf32, #tpu.memory_space<vmem>>, %arg2: memref<16x128xbf16, #tpu.memory_space<vmem>>, %arg3: memref<1x128xf32, #tpu.memory_space<vmem>>, %arg4: memref<128x128xbf16, #tpu.memory_space<vmem>>, %arg5: memref<1x128xf32, #tpu.memory_space<vmem>>, %arg6: memref<1x128xf32, #tpu.memory_space<vmem>>, %arg7: memref<1x1xf32, #tpu.memory_space<vmem>>, %arg8: memref<192x1xf32, #tpu.memory_space<vmem>>) attributes {dimension_semantics = [#tpu.dimension_semantics<parallel>], iteration_bounds = array<i64: 2>, scalar_prefetch = 0 : i64, scratch_operands = 0 : i64, tpu.core_type = #tpu.core_type<tc>, window_params = [{transform_indices = @transform_0, window_bounds = array<i64: 192, 16>}, {pipeline_mode = #tpu.pipeline_mode<synchronous>, transform_indices = @transform_1, window_bounds = array<i64: 16, 128>}, {pipeline_mode = #tpu.pipeline_mode<synchronous>, transform_indices = @transform_2, window_bounds = array<i64: 1, 128>}, {pipeline_mode = #tpu.pipeline_mode<synchronous>, transform_indices = @transform_3, window_bounds = array<i64: 128, 128>}, {pipeline_mode = #tpu.pipeline_mode<synchronous>, transform_indices = @transform_4, window_bounds = array<i64: 1, 128>}, {pipeline_mode = #tpu.pipeline_mode<synchronous>, transform_indices = @transform_5, window_bounds = array<i64: 1, 128>}, {pipeline_mode = #tpu.pipeline_mode<synchronous>, transform_indices = @transform_6, window_bounds = array<i64: 1, 1>}, {transform_indices = @transform_7, window_bounds = array<i64: 192, 1>}]} {
    %c0 = arith.constant 0 : index
    %c0_0 = arith.constant 0 : index
    %0 = vector.load %arg1[%c0, %c0_0] : memref<192x16xf32, #tpu.memory_space<vmem>>, vector<192x16xf32>
    %1 = arith.truncf %0 : vector<192x16xf32> to vector<192x16xbf16>
    %c0_1 = arith.constant 0 : index
    %c0_2 = arith.constant 0 : index
    %2 = vector.load %arg2[%c0_1, %c0_2] : memref<16x128xbf16, #tpu.memory_space<vmem>>, vector<16x128xbf16>
    %cst = arith.constant dense<0.000000e+00> : vector<192x128xf32>
    %3 = tpu.matmul %1, %2, %cst {dimension_numbers = #tpu.dot_dimension_numbers<[1], [0], [0], [1], [0, 0, 1, 1], [], []>} : vector<192x16xbf16>, vector<16x128xbf16>, vector<192x128xf32> -> vector<192x128xf32>
    %c0_3 = arith.constant 0 : index
    %c0_4 = arith.constant 0 : index
    %4 = vector.load %arg3[%c0_3, %c0_4] : memref<1x128xf32, #tpu.memory_space<vmem>>, vector<1x128xf32>
    %5 = vector.broadcast %4 : vector<1x128xf32> to vector<192x128xf32>
    %6 = arith.addf %3, %5 : vector<192x128xf32>
    %cst_5 = arith.constant 0.000000e+00 : f32
    %7 = vector.broadcast %cst_5 : f32 to vector<192x128xf32>
    %8 = arith.maximumf %6, %7 : vector<192x128xf32>
    %9 = arith.truncf %8 : vector<192x128xf32> to vector<192x128xbf16>
    %c0_6 = arith.constant 0 : index
    %c0_7 = arith.constant 0 : index
    %10 = vector.load %arg4[%c0_6, %c0_7] : memref<128x128xbf16, #tpu.memory_space<vmem>>, vector<128x128xbf16>
    %cst_8 = arith.constant dense<0.000000e+00> : vector<192x128xf32>
    %11 = tpu.matmul %9, %10, %cst_8 {dimension_numbers = #tpu.dot_dimension_numbers<[1], [0], [0], [1], [0, 0, 1, 1], [], []>} : vector<192x128xbf16>, vector<128x128xbf16>, vector<192x128xf32> -> vector<192x128xf32>
    %c0_9 = arith.constant 0 : index
    %c0_10 = arith.constant 0 : index
    %12 = vector.load %arg5[%c0_9, %c0_10] : memref<1x128xf32, #tpu.memory_space<vmem>>, vector<1x128xf32>
    %13 = vector.broadcast %12 : vector<1x128xf32> to vector<192x128xf32>
    %14 = arith.addf %11, %13 : vector<192x128xf32>
    %cst_11 = arith.constant 0.000000e+00 : f32
    %15 = vector.broadcast %cst_11 : f32 to vector<192x128xf32>
    %16 = arith.maximumf %14, %15 : vector<192x128xf32>
    %c0_12 = arith.constant 0 : index
    %c0_13 = arith.constant 0 : index
    %17 = vector.load %arg6[%c0_12, %c0_13] : memref<1x128xf32, #tpu.memory_space<vmem>>, vector<1x128xf32>
    %18 = vector.broadcast %17 : vector<1x128xf32> to vector<192x128xf32>
    %19 = arith.mulf %16, %18 : vector<192x128xf32>
    %cst_14 = arith.constant dense<0.000000e+00> : vector<192xf32>
    %20 = vector.multi_reduction <add>, %19, %cst_14 [1] : vector<192x128xf32> to vector<192xf32>
    %21 = vector.shape_cast %20 : vector<192xf32> to vector<192x1xf32>
    %c0_15 = arith.constant 0 : index
    %c0_16 = arith.constant 0 : index
    %22 = vector.load %arg7[%c0_15, %c0_16] : memref<1x1xf32, #tpu.memory_space<vmem>>, vector<1x1xf32>
    %23 = vector.broadcast %22 : vector<1x1xf32> to vector<192x1xf32>
    %24 = arith.addf %21, %23 : vector<192x1xf32>
    %c0_17 = arith.constant 0 : index
    %c0_18 = arith.constant 0 : index
    %25 = vector.load %arg8[%c0_17, %c0_18] : memref<192x1xf32, #tpu.memory_space<vmem>>, vector<192x1xf32>
    tpu.vector_store %arg8[%c0_17, %c0_18], %24 {strides = array<i32>} : memref<192x1xf32, #tpu.memory_space<vmem>>, vector<192x1xf32>,
    return
  }
  func.func @transform_0(%arg0: i32) -> (i32, i32) {
    %c0_i32 = arith.constant 0 : i32
    %c0_i32_0 = arith.constant 0 : i32
    return %arg0, %c0_i32 : i32, i32
  }
  func.func @transform_1(%arg0: i32) -> (i32, i32) {
    %c0_i32 = arith.constant 0 : i32
    %c0_i32_0 = arith.constant 0 : i32
    %c0_i32_1 = arith.constant 0 : i32
    return %c0_i32, %c0_i32_0 : i32, i32
  }
  func.func @transform_2(%arg0: i32) -> (i32, i32) {
    %c0_i32 = arith.constant 0 : i32
    %c0_i32_0 = arith.constant 0 : i32
    %c0_i32_1 = arith.constant 0 : i32
    return %c0_i32, %c0_i32_0 : i32, i32
  }
  func.func @transform_3(%arg0: i32) -> (i32, i32) {
    %c0_i32 = arith.constant 0 : i32
    %c0_i32_0 = arith.constant 0 : i32
    %c0_i32_1 = arith.constant 0 : i32
    return %c0_i32, %c0_i32_0 : i32, i32
  }
  func.func @transform_4(%arg0: i32) -> (i32, i32) {
    %c0_i32 = arith.constant 0 : i32
    %c0_i32_0 = arith.constant 0 : i32
    %c0_i32_1 = arith.constant 0 : i32
    return %c0_i32, %c0_i32_0 : i32, i32
  }
  func.func @transform_5(%arg0: i32) -> (i32, i32) {
    %c0_i32 = arith.constant 0 : i32
    %c0_i32_0 = arith.constant 0 : i32
    %c0_i32_1 = arith.constant 0 : i32
    return %c0_i32, %c0_i32_0 : i32, i32
  }
  func.func @transform_6(%arg0: i32) -> (i32, i32) {
    %c0_i32 = arith.constant 0 : i32
    %c0_i32_0 = arith.constant 0 : i32
    %c0_i32_1 = arith.constant 0 : i32
    return %c0_i32, %c0_i32_0 : i32, i32
  }
  func.func @transform_7(%arg0: i32) -> (i32, i32) {
    %c0_i32 = arith.constant 0 : i32
    %c0_i32_0 = arith.constant 0 : i32
    return %arg0, %c0_i32 : i32, i32
  }
}

</mosaic_0001>

<bundles_post_ra>
// kernel: discriminator_forward.1
= control target key start
LH: loop header
LB: loop body
LE: loop exit
PB: predicated region body
PF: predicated region fallthrough
CT: control target
= control target key end

     0   :  { %s1170_s26 = smov 0   ;;  %s1422_s0 = inlined_call_operand.vmem [shape: f32[384,16], index: 0, kind: input, shape index: {}]   ;;  %s1423_s1 = inlined_call_operand.vmem [shape: bf16[16,128], index: 1, kind: input, shape index: {}]   ;;  %s1424_s2 = inlined_call_operand.vmem [shape: f32[1,128], index: 2, kind: input, shape index: {}]   ;;  %s1425_s3 = inlined_call_operand.vmem [shape: bf16[128,128], index: 3, kind: input, shape index: {}]   ;;  %s1426_s4 = inlined_call_operand.vmem [shape: f32[1,128], index: 4, kind: input, shape index: {}]   ;;  %s1427_s5 = inlined_call_operand.vmem [shape: f32[1,128], index: 5, kind: input, shape index: {}]   ;;  %s1428_s6 = inlined_call_operand.<no memory space> [shape: f32[1,1], index: 6, kind: input, shape index: {}]   ;;  %s1429_s7 = inlined_call_operand.vmem [shape: f32[384,1], index: 7, kind: output, shape index: {}]  }
   0x1   :  { %v12_v0 = vstv %s1428_s6 }
   0x2   :  { %13 = vst [vmem:[#allocation2] sm:$0x1] %v12_v0 }
   0x3 LB: > { %s953_s27 = sadd.s32 4294967295, %s1125_s26   ;;  %p957_p0 = scmp.ge.s32.totalorder %s1125_s26, 1  ;;  %s1125_s26 = sphi %s1170_s26, %s19_s26  }
   0x4   : > { %p240_p1 = scmp.lt.s32.totalorder %s1125_s26, 3 }
   0x6   : > { %p241_p2 = pnand %p957_p0, %p240_p1 }
   0x7   : > { %v1110_v1 = vld [vmem:[%s1423_s1] sm:$0xff] (!%p241_p2)   ;;  %s272_s6 = smul.u32 (!%p241_p2), 24, %s953_s27  ;;  %v1112_v3 = vld [vmem:[%s1425_s3 + $0x8] sm:$0xff] (!%p241_p2)   ;;  %v1113_v4 = vld [vmem:[%s1425_s3 + $0x10] sm:$0xff] (!%p241_p2)   ;;  %vm336_vm0 = vcmask (!%p241_p2), 130048   ;;  %vm872_vm1 = vcmask (!%p241_p2), 7168  }
   0x8   : > { %244 = sbr.rel (%p241_p2) target bundleno = 654 (0x28e), region = 48  ;;  %v1111_v2 = vld [vmem:[%s1425_s3] sm:$0xff] (!%p241_p2)   ;;  %1020 = vmatprep.subr.bf16.mxu0 (!%p241_p2), %v1110_v1  ;;  %v1114_v14 = vld [vmem:[%s1425_s3 + $0x18] sm:$0xff] (!%p241_p2)   ;;  %v1116_v22 = vld [vmem:[%s1425_s3 + $0x28] sm:$0xff] (!%p241_p2)  }
   0x9   : > { %p273_p3 = scmp.lt.s32.totalorder (!%p241_p2), %s272_s6, 47  ;;  %1021 = vmatpush3.bf16.msra.mxu0 (!%p241_p2), %v1110_v1  ;;  %1086 = vmatprep.subr.bf16.mxu1 (!%p241_p2), %v1111_v2  ;;  %v1115_v19 = vld [vmem:[%s1425_s3 + $0x20] sm:$0xff] (!%p241_p2)   ;;  %v1117_v44 = vld [vmem:[%s1425_s3 + $0x30] sm:$0xff] (!%p241_p2)   ;;  %v1118_v45 = vld [vmem:[%s1425_s3 + $0x38] sm:$0xff] (!%p241_p2)  }
   0xa   : > { %1046 = vmatprep.subr.bf16.mxu0 (!%p241_p2), %v1111_v2  ;;  %1094 = vmatpush3.bf16.msra.mxu1 (!%p241_p2), %v1111_v2  ;;  %v1254_v46 = vld [vmem:[%s1424_s2] ss:$0 sm:$0xff] (!%p241_p2) }
   0xb   : > { %1087 = vmatprep.subr.bf16.mxu1 (!%p241_p2), %v1112_v3 }
   0xe   : > { %1095 = vmatpush3.bf16.msra.mxu1 (!%p241_p2), %v1112_v3 }
   0xf   : > { %s1431_s6 = smov (!%p273_p3, %s272_s6), 47  ;;  %1088 = vmatprep.subr.bf16.mxu1 %v1113_v4 }
  0x10   : > { %s958_s11 = sshll.u32 %s1431_s6, 3 }
  0x11   : > { %s1198_s16 = scalar_lea.vmem %s1422_s0, %s958_s11  ;;  %s1345_s14 = scalar_lea.vmem %s1429_s7, %s958_s11 }
  0x12   : > { %v285_v5 = vld [vmem:[%s1198_s16] sm:$0xff]  ;;  %v286_v6 = vld [vmem:[%s1198_s16 + $0x8] sm:$0xff]  ;;  %v287_v7 = vld [vmem:[%s1198_s16 + $0x10] sm:$0xff]  ;;  %1096 = vmatpush3.bf16.msra.mxu1 %v1113_v4 }
  0x13   : > { %v309_v8 = vpack.c.bf16 %v286_v6, %v285_v5  ;;  %v288_v9 = vld [vmem:[%s1198_s16 + $0x18] sm:$0xff]  ;;  %v289_v10 = vld [vmem:[%s1198_s16 + $0x20] sm:$0xff]  ;;  %v290_v11 = vld [vmem:[%s1198_s16 + $0x28] sm:$0xff]  ;;  %1089 = vmatprep.subr.bf16.mxu1 %v1114_v14 }
  0x14   : > { %v310_v12 = vpack.c.bf16 %v288_v9, %v287_v7  ;;  %v311_v13 = vpack.c.bf16 %v290_v11, %v289_v10  ;;  %v291_v15 = vld [vmem:[%s1198_s16 + $0x30] sm:$0xff]  ;;  %v292_v16 = vld [vmem:[%s1198_s16 + $0x38] sm:$0xff]  ;;  %v293_v17 = vld [vmem:[%s1198_s16 + $0x40] sm:$0xff] }
  0x15   : > { %1022 = vmatprep.mubr.msk.bf16.mxu0 %vm336_vm0, %v309_v8  ;;  %v294_v18 = vld [vmem:[%s1198_s16 + $0x48] sm:$0xff]  ;;  %v312_v20 = vpack.c.bf16 %v292_v16, %v291_v15  ;;  %v295_v23 = vld [vmem:[%s1198_s16 + $0x50] sm:$0xff]  ;;  %v296_v24 = vld [vmem:[%s1198_s16 + $0x58] sm:$0xff] }
  0x16   : > { %1023 = vmatmul.mubr.msk.bf16.vlgmr.msra.gmra.mrb[0].mxu0 %vm336_vm0, %v310_v12  ;;  %1097 = vmatpush3.bf16.msra.mxu1 %v1114_v14  ;;  %v313_v21 = vpack.c.bf16 %v294_v18, %v293_v17  ;;  %v297_v25 = vld [vmem:[%s1198_s16 + $0x60] sm:$0xff]  ;;  %v298_v26 = vld [vmem:[%s1198_s16 + $0x68] sm:$0xff]  ;;  %v314_v27 = vpack.c.bf16 %v296_v24, %v295_v23  ;;  %v299_v29 = vld [vmem:[%s1198_s16 + $0x70] sm:$0xff] }
  0x17   : > { %1026 = vmatprep.mubr.msk.bf16.mxu0 %vm336_vm0, %v311_v13  ;;  %1047 = vmatpush3.bf16.msra.mxu0 %v1111_v2  ;;  %v315_v28 = vpack.c.bf16 %v298_v26, %v297_v25  ;;  %v300_v30 = vld [vmem:[%s1198_s16 + $0x78] sm:$0xff]  ;;  %v301_v31 = vld [vmem:[%s1198_s16 + $0x80] sm:$0xff]  ;;  %v302_v32 = vld [vmem:[%s1198_s16 + $0x88] sm:$0xff] }
  0x18   : > { %1048 = vmatprep.subr.bf16.mxu0 %v1112_v3  ;;  %1090 = vmatprep.subr.bf16.mxu1 %v1115_v19  ;;  %v316_v33 = vpack.c.bf16 %v300_v30, %v299_v29  ;;  %v317_v34 = vpack.c.bf16 %v302_v32, %v301_v31  ;;  %v303_v35 = vld [vmem:[%s1198_s16 + $0x90] sm:$0xff]  ;;  %v304_v36 = vld [vmem:[%s1198_s16 + $0x98] sm:$0xff]  ;;  %v305_v37 = vld [vmem:[%s1198_s16 + $0xa0] sm:$0xff] }
  0x19   : > { %v306_v38 = vld [vmem:[%s1198_s16 + $0xa8] sm:$0xff]  ;;  %v318_v39 = vpack.c.bf16 %v304_v36, %v303_v35  ;;  %v307_v41 = vld [vmem:[%s1198_s16 + $0xb0] sm:$0xff]  ;;  %v308_v42 = vld [vmem:[%s1198_s16 + $0xb8] sm:$0xff] }
  0x1a   : > { %1098 = vmatpush3.bf16.msra.mxu1 %v1115_v19  ;;  %v319_v40 = vpack.c.bf16 %v306_v38, %v305_v37  ;;  %v320_v43 = vpack.c.bf16 %v308_v42, %v307_v41 }
  0x1b   : > { %1049 = vmatpush3.bf16.msra.mxu0 %v1112_v3  ;;  %1091 = vmatprep.subr.bf16.mxu1 %v1116_v22 }
  0x1c   : > { %1050 = vmatprep.subr.bf16.mxu0 %v1113_v4 }
  0x1e   : > { %1027 = vmatmul.mubr.msk.bf16.gmra.mrb[4].mxu0 %vm336_vm0, %v312_v20  ;;  %1099 = vmatpush3.bf16.msra.mxu1 %v1116_v22 }
  0x1f   : > { %1030 = vmatprep.mubr.msk.bf16.mxu0 %vm336_vm0, %v313_v21  ;;  %1051 = vmatpush3.bf16.msra.mxu0 %v1113_v4 }
  0x20   : > { %1052 = vmatprep.subr.bf16.mxu0 %v1114_v14  ;;  %1092 = vmatprep.subr.bf16.mxu1 %v1117_v44 }
  0x22   : > { %1100 = vmatpush3.bf16.msra.mxu1 %v1117_v44 }
  0x23   : > { %1053 = vmatpush3.bf16.msra.mxu0 %v1114_v14  ;;  %1093 = vmatprep.subr.bf16.mxu1 %v1118_v45 }
  0x24   : > { %1054 = vmatprep.subr.bf16.mxu0 %v1115_v19 }
  0x26   : > { %1031 = vmatmul.mubr.msk.bf16.gmra.mrb[8].mxu0 %vm336_vm0, %v314_v27  ;;  %1101 = vmatpush3.bf16.msra.mxu1 %v1118_v45 }
  0x27   : > { %1034 = vmatprep.mubr.msk.bf16.mxu0 %vm336_vm0, %v315_v28  ;;  %1055 = vmatpush3.bf16.msra.mxu0 %v1115_v19 }
  0x28   : > { %1056 = vmatprep.subr.bf16.mxu0 %v1116_v22 }
  0x2b   : > { %1057 = vmatpush3.bf16.msra.mxu0 %v1116_v22 }
  0x2c   : > { %1058 = vmatprep.subr.bf16.mxu0 %v1117_v44 }
  0x2e   : > { %1035 = vmatmul.mubr.msk.bf16.gmra.mrb[12].mxu0 %vm336_vm0, %v316_v33 }
  0x2f   : > { %1038 = vmatprep.mubr.msk.bf16.mxu0 %vm336_vm0, %v317_v34  ;;  %1059 = vmatpush3.bf16.msra.mxu0 %v1117_v44 }
  0x30   : > { %1060 = vmatprep.subr.bf16.mxu0 %v1118_v45 }
  0x33   : > { %1061 = vmatpush3.bf16.msra.mxu0 %v1118_v45 }
  0x36   : > { %1039 = vmatmul.mubr.msk.bf16.gmra.mrb[16].mxu0 %vm336_vm0, %v318_v39 }
  0x37   : > { %1042 = vmatprep.mubr.msk.bf16.mxu0 %vm336_vm0, %v319_v40 }
  0x3e   : > { %1043 = vmatmul.mubr.msk.bf16.gmra.mrb[20].mxu0 %vm336_vm0, %v320_v43 }
  0xe9   : > { %v1024_v47 = vpop.f32.mrb[0].mxu0 }
  0xea   : > { %v416_v48 = vadd.f32 %v1024_v47, %v1254_v46  ;;  %v407_v49 = vpop.f32.mrb[1].mxu0 }
  0xeb   : > { %v408_v50 = vadd.f32 %v1254_v46, %v407_v49  ;;  %v1025_v51 = vpop.f32.mrb[2].mxu0 }
  0xec   : > { %v419_v52 = vadd.f32 %v1025_v51, %v1254_v46  ;;  %v410_v53 = vpop.f32.mrb[3].mxu0  ;;  %v504_v55 = vmax.f32 %v416_v48, 0.0 }
  0xed   : > { %v411_v54 = vadd.f32 %v1254_v46, %v410_v53  ;;  %v502_v57 = vmax.f32 %v408_v50, 0.0 }
  0xee   : > { %v505_v56 = vmax.f32 %v419_v52, 0.0 }
  0xef   : > { %v503_v58 = vmax.f32 %v411_v54, 0.0 }
  0xf0   : > { %v527_v59 = vpack.c.bf16 %v505_v56, %v504_v55 }
  0xf1   : > { %v526_v60 = vpack.c.bf16 %v503_v58, %v502_v57  ;;  %v1028_v61 = vpop.f32.mrb[4].mxu0 }
  0xf2   : > { %v432_v62 = vadd.f32 %v1028_v61, %v1254_v46  ;;  %v423_v63 = vpop.f32.mrb[5].mxu0 }
  0xf3   : > { %v424_v0 = vadd.f32 %v1254_v46, %v423_v63  ;;  %v1029_v1 = vpop.f32.mrb[6].mxu0  ;;  %1062 = vmatprep.mubr.bf16.mxu0 %v526_v60 }
  0xf4   : > { %v435_v2 = vadd.f32 %v1029_v1, %v1254_v46  ;;  %v426_v3 = vpop.f32.mrb[7].mxu0  ;;  %1063 = vmatmul.mubr.bf16.vlgmr.msra.gmra.mrb[24].mxu0 %v527_v59  ;;  %v508_v5 = vmax.f32 %v432_v62, 0.0 }
  0xf5   : > { %v427_v4 = vadd.f32 %v1254_v46, %v426_v3  ;;  %v506_v7 = vmax.f32 %v424_v0, 0.0 }
  0xf6   : > { %v509_v6 = vmax.f32 %v435_v2, 0.0 }
  0xf7   : > { %v507_v8 = vmax.f32 %v427_v4, 0.0  ;;  %v1283_v4 = vld [vmem:[%s1426_s4] ss:$0 sm:$0xff] }
  0xf8   : > { %v529_v9 = vpack.c.bf16 %v509_v6, %v508_v5 }
  0xf9   : > { %v1032_v10 = vpop.f32.mrb[8].mxu0  ;;  %v528_v11 = vpack.c.bf16 %v507_v8, %v506_v7 }
  0xfa   : > { %v448_v12 = vadd.f32 %v1032_v10, %v1254_v46  ;;  %v439_v13 = vpop.f32.mrb[9].mxu0 }
  0xfb   : > { %v440_v14 = vadd.f32 %v1254_v46, %v439_v13  ;;  %v1033_v15 = vpop.f32.mrb[10].mxu0  ;;  %1066 = vmatprep.mubr.bf16.mxu1 %v528_v11 }
  0xfc   : > { %v451_v16 = vadd.f32 %v1033_v15, %v1254_v46  ;;  %v442_v17 = vpop.f32.mrb[11].mxu0  ;;  %1067 = vmatmul.mubr.bf16.vlgmr.msra.gmra.mrb[0].mxu1 %v529_v9  ;;  %v512_v19 = vmax.f32 %v448_v12, 0.0  ;;  %v1290_v9 = vld [vmem:[%s1427_s5] ss:$0 sm:$0xff] }
  0xfd   : > { %v443_v18 = vadd.f32 %v1254_v46, %v442_v17  ;;  %v510_v21 = vmax.f32 %v440_v14, 0.0 }
  0xfe   : > { %v513_v20 = vmax.f32 %v451_v16, 0.0 }
  0xff   : > { %v511_v22 = vmax.f32 %v443_v18, 0.0 }
 0x100   : > { %v531_v23 = vpack.c.bf16 %v513_v20, %v512_v19 }
 0x101   : > { %v530_v24 = vpack.c.bf16 %v511_v22, %v510_v21  ;;  %v1036_v25 = vpop.f32.mrb[12].mxu0 }
 0x102   : > { %v464_v26 = vadd.f32 %v1036_v25, %v1254_v46  ;;  %v455_v27 = vpop.f32.mrb[13].mxu0 }
 0x103   : > { %v456_v28 = vadd.f32 %v1254_v46, %v455_v27  ;;  %v1037_v29 = vpop.f32.mrb[14].mxu0  ;;  %1070 = vmatprep.mubr.bf16.mxu1 %v530_v24 }
 0x104   : > { %v467_v30 = vadd.f32 %v1037_v29, %v1254_v46  ;;  %v458_v31 = vpop.f32.mrb[15].mxu0  ;;  %1071 = vmatmul.mubr.bf16.gmra.mrb[4].mxu1 %v531_v23  ;;  %v516_v33 = vmax.f32 %v464_v26, 0.0 }
 0x105   : > { %v459_v32 = vadd.f32 %v1254_v46, %v458_v31  ;;  %v514_v35 = vmax.f32 %v456_v28, 0.0 }
 0x106   : > { %v517_v34 = vmax.f32 %v467_v30, 0.0 }
 0x107   : > { %v515_v36 = vmax.f32 %v459_v32, 0.0 }
 0x108   : > { %v533_v37 = vpack.c.bf16 %v517_v34, %v516_v33 }
 0x109   : > { %v532_v38 = vpack.c.bf16 %v515_v36, %v514_v35  ;;  %v1040_v39 = vpop.f32.mrb[16].mxu0 }
 0x10a   : > { %v480_v40 = vadd.f32 %v1040_v39, %v1254_v46  ;;  %v471_v41 = vpop.f32.mrb[17].mxu0 }
 0x10b   : > { %v472_v42 = vadd.f32 %v1254_v46, %v471_v41  ;;  %v1041_v43 = vpop.f32.mrb[18].mxu0  ;;  %1074 = vmatprep.mubr.bf16.mxu1 %v532_v38 }
 0x10c   : > { %v483_v44 = vadd.f32 %v1041_v43, %v1254_v46  ;;  %v474_v45 = vpop.f32.mrb[19].mxu0  ;;  %1075 = vmatmul.mubr.bf16.gmra.mrb[8].mxu1 %v533_v37  ;;  %v520_v48 = vmax.f32 %v480_v40, 0.0 }
 0x10d   : > { %v475_v47 = vadd.f32 %v1254_v46, %v474_v45  ;;  %v518_v50 = vmax.f32 %v472_v42, 0.0 }
 0x10e   : > { %v521_v49 = vmax.f32 %v483_v44, 0.0 }
 0x10f   : > { %v519_v51 = vmax.f32 %v475_v47, 0.0 }
 0x110   : > { %v535_v52 = vpack.c.bf16 %v521_v49, %v520_v48 }
 0x111   : > { %v534_v53 = vpack.c.bf16 %v519_v51, %v518_v50  ;;  %v1044_v54 = vpop.f32.mrb[20].mxu0 }
 0x112   : > { %v496_v55 = vadd.f32 %v1044_v54, %v1254_v46  ;;  %v487_v56 = vpop.f32.mrb[21].mxu0 }
 0x113   : > { %v488_v57 = vadd.f32 %v1254_v46, %v487_v56  ;;  %v1045_v58 = vpop.f32.mrb[22].mxu0  ;;  %1078 = vmatprep.mubr.bf16.mxu1 %v534_v53 }
 0x114   : > { %v499_v59 = vadd.f32 %v1045_v58, %v1254_v46  ;;  %v490_v60 = vpop.f32.mrb[23].mxu0  ;;  %1079 = vmatmul.mubr.bf16.gmra.mrb[12].mxu1 %v535_v52  ;;  %v524_v62 = vmax.f32 %v496_v55, 0.0 }
 0x115   : > { %v491_v61 = vadd.f32 %v1254_v46, %v490_v60  ;;  %v522_v0 = vmax.f32 %v488_v57, 0.0 }
 0x116   : > { %v525_v63 = vmax.f32 %v499_v59, 0.0 }
 0x117   : > { %v523_v1 = vmax.f32 %v491_v61, 0.0 }
 0x118   : > { %v537_v2 = vpack.c.bf16 %v525_v63, %v524_v62 }
 0x119   : > { %v536_v3 = vpack.c.bf16 %v523_v1, %v522_v0 }
 0x11b   : > { %1082 = vmatprep.mubr.bf16.mxu1 %v536_v3 }
 0x11c   : > { %1083 = vmatmul.mubr.bf16.gmra.mrb[16].mxu1 %v537_v2 }
 0x1c7   : > { %v1064_v5 = vpop.f32.mrb[24].mxu0 }
 0x1c8   : > { %v652_v6 = vadd.f32 %v1064_v5, %v1283_v4  ;;  %v643_v7 = vpop.f32.mrb[25].mxu0 }
 0x1c9   : > { %v644_v8 = vadd.f32 %v1283_v4, %v643_v7  ;;  %v1065_v46 = vpop.f32.mrb[26].mxu0 }
 0x1ca   : > { %v740_v10 = vmax.f32 %v652_v6, 0.0  ;;  %v655_v11 = vadd.f32 %v1065_v46, %v1283_v4  ;;  %v646_v12 = vpop.f32.mrb[27].mxu0 }
 0x1cb   : > { %v738_v13 = vmax.f32 %v644_v8, 0.0  ;;  %v647_v14 = vadd.f32 %v1283_v4, %v646_v12 }
 0x1cc   : > { %v741_v15 = vmax.f32 %v655_v11, 0.0  ;;  %v771_v16 = vmul.f32 %v1290_v9, %v740_v10 }
 0x1cd   : > { %v739_v17 = vmax.f32 %v647_v14, 0.0  ;;  %v769_v18 = vmul.f32 %v1290_v9, %v738_v13 }
 0x1ce   : > { %797 = vadd.xlane.f32.xlu1 %v771_v16  ;;  %v772_v22 = vmul.f32 %v1290_v9, %v741_v15 }
 0x1cf   : > { %v1068_v19 = vpop.f32.mrb[0].mxu1  ;;  %793 = vadd.xlane.f32.xlu0 %v769_v18  ;;  %v770_v25 = vmul.f32 %v1290_v9, %v739_v17 }
 0x1d0   : > { %v668_v20 = vadd.f32 %v1068_v19, %v1283_v4  ;;  %v659_v21 = vpop.f32.mrb[1].mxu1 }
 0x1d1   : > { %v660_v23 = vadd.f32 %v1283_v4, %v659_v21  ;;  %v1069_v24 = vpop.f32.mrb[2].mxu1 }
 0x1d2   : > { %v744_v26 = vmax.f32 %v668_v20, 0.0  ;;  %v671_v27 = vadd.f32 %v1069_v24, %v1283_v4  ;;  %v662_v28 = vpop.f32.mrb[3].mxu1  ;;  %799 = vadd.xlane.f32.xlu1 %v772_v22 }
 0x1d3   : > { %v663_v29 = vadd.f32 %v1283_v4, %v662_v28  ;;  %795 = vadd.xlane.f32.xlu0 %v770_v25  ;;  %v742_v32 = vmax.f32 %v660_v23, 0.0 }
 0x1d4   : > { %v745_v30 = vmax.f32 %v671_v27, 0.0  ;;  %v775_v31 = vmul.f32 %v1290_v9, %v744_v26 }
 0x1d5   : > { %v743_v33 = vmax.f32 %v663_v29, 0.0  ;;  %v773_v40 = vmul.f32 %v1290_v9, %v742_v32 }
 0x1d6   : > { %v776_v34 = vmul.f32 %v1290_v9, %v745_v30 }
 0x1d7   : > { %v1072_v35 = vpop.f32.mrb[4].mxu1  ;;  %805 = vadd.xlane.f32.xlu0 %v775_v31  ;;  %v774_v44 = vmul.f32 %v1290_v9, %v743_v33 }
 0x1d8   : > { %v684_v36 = vadd.f32 %v1072_v35, %v1283_v4  ;;  %v675_v37 = vpop.f32.mrb[5].mxu1  ;;  %807 = vadd.xlane.f32.xlu1 %v776_v34 }
 0x1d9   : > { %v676_v38 = vadd.f32 %v1283_v4, %v675_v37  ;;  %v1073_v39 = vpop.f32.mrb[6].mxu1 }
 0x1da   : > { %v748_v41 = vmax.f32 %v684_v36, 0.0  ;;  %v687_v42 = vadd.f32 %v1073_v39, %v1283_v4  ;;  %v678_v43 = vpop.f32.mrb[7].mxu1  ;;  %v1338_v39 = vld [vmem:[#allocation2] ss:$0 sm:$0xff] }
 0x1db   : > { %v679_v45 = vadd.f32 %v1283_v4, %v678_v43  ;;  %801 = vadd.xlane.f32.xlu0 %v773_v40  ;;  %v746_v49 = vmax.f32 %v676_v38, 0.0 }
 0x1dc   : > { %v749_v47 = vmax.f32 %v687_v42, 0.0  ;;  %803 = vadd.xlane.f32.xlu1 %v774_v44  ;;  %v779_v48 = vmul.f32 %v1290_v9, %v748_v41 }
 0x1dd   : > { %v747_v50 = vmax.f32 %v679_v45, 0.0  ;;  %v777_v57 = vmul.f32 %v1290_v9, %v746_v49 }
 0x1de   : > { %v780_v51 = vmul.f32 %v1290_v9, %v749_v47 }
 0x1df   : > { %v1076_v52 = vpop.f32.mrb[8].mxu1  ;;  %813 = vadd.xlane.f32.xlu0 %v779_v48  ;;  %v778_v61 = vmul.f32 %v1290_v9, %v747_v50 }
 0x1e0   : > { %v700_v53 = vadd.f32 %v1076_v52, %v1283_v4  ;;  %v691_v54 = vpop.f32.mrb[9].mxu1  ;;  %815 = vadd.xlane.f32.xlu1 %v780_v51 }
 0x1e1   : > { %v692_v55 = vadd.f32 %v1283_v4, %v691_v54  ;;  %v1077_v56 = vpop.f32.mrb[10].mxu1 }
 0x1e2   : > { %v752_v58 = vmax.f32 %v700_v53, 0.0  ;;  %v703_v59 = vadd.f32 %v1077_v56, %v1283_v4  ;;  %v694_v60 = vpop.f32.mrb[11].mxu1 }
 0x1e3   : > { %v695_v62 = vadd.f32 %v1283_v4, %v694_v60  ;;  %809 = vadd.xlane.f32.xlu0 %v777_v57  ;;  %v750_v1 = vmax.f32 %v692_v55, 0.0 }
 0x1e4   : > { %v753_v63 = vmax.f32 %v703_v59, 0.0  ;;  %811 = vadd.xlane.f32.xlu1 %v778_v61  ;;  %v783_v0 = vmul.f32 %v1290_v9, %v752_v58 }
 0x1e5   : > { %v751_v2 = vmax.f32 %v695_v62, 0.0  ;;  %v781_v10 = vmul.f32 %v1290_v9, %v750_v1 }
 0x1e6   : > { %v784_v3 = vmul.f32 %v1290_v9, %v753_v63 }
 0x1e7   : > { %v1080_v5 = vpop.f32.mrb[12].mxu1  ;;  %821 = vadd.xlane.f32.xlu0 %v783_v0  ;;  %v782_v14 = vmul.f32 %v1290_v9, %v751_v2 }
 0x1e8   : > { %v716_v6 = vadd.f32 %v1080_v5, %v1283_v4  ;;  %v707_v7 = vpop.f32.mrb[13].mxu1  ;;  %823 = vadd.xlane.f32.xlu1 %v784_v3 }
 0x1e9   : > { %v708_v8 = vadd.f32 %v1283_v4, %v707_v7  ;;  %v1081_v46 = vpop.f32.mrb[14].mxu1 }
 0x1ea   : > { %v756_v11 = vmax.f32 %v716_v6, 0.0  ;;  %v719_v12 = vadd.f32 %v1081_v46, %v1283_v4  ;;  %v710_v13 = vpop.f32.mrb[15].mxu1 }
 0x1eb   : > { %v711_v15 = vadd.f32 %v1283_v4, %v710_v13  ;;  %817 = vadd.xlane.f32.xlu0 %v781_v10  ;;  %v754_v18 = vmax.f32 %v708_v8, 0.0 }
 0x1ec   : > { %v757_v16 = vmax.f32 %v719_v12, 0.0  ;;  %819 = vadd.xlane.f32.xlu1 %v782_v14  ;;  %v787_v17 = vmul.f32 %v1290_v9, %v756_v11 }
 0x1ed   : > { %v755_v19 = vmax.f32 %v711_v15, 0.0  ;;  %v785_v26 = vmul.f32 %v1290_v9, %v754_v18 }
 0x1ee   : > { %v788_v20 = vmul.f32 %v1290_v9, %v757_v16 }
 0x1ef   : > { %v1084_v21 = vpop.f32.mrb[16].mxu1  ;;  %829 = vadd.xlane.f32.xlu0 %v787_v17  ;;  %v786_v28 = vmul.f32 %v1290_v9, %v755_v19 }
 0x1f0   : > { %v723_v22 = vpop.f32.mrb[17].mxu1  ;;  %831 = vadd.xlane.f32.xlu1 %v788_v20  ;;  %v732_v23 = vadd.f32 %v1084_v21, %v1283_v4 }
 0x1f1   : > { %v724_v24 = vadd.f32 %v1283_v4, %v723_v22  ;;  %v1085_v25 = vpop.f32.mrb[18].mxu1 }
 0x1f2   : > { %v726_v27 = vpop.f32.mrb[19].mxu1  ;;  %v735_v30 = vadd.f32 %v1085_v25, %v1283_v4  ;;  %v760_v32 = vmax.f32 %v732_v23, 0.0 }
 0x1f3   : > { %v758_v29 = vmax.f32 %v724_v24, 0.0  ;;  %v727_v31 = vadd.f32 %v1283_v4, %v726_v27  ;;  %825 = vadd.xlane.f32.xlu0 %v785_v26 }
 0x1f4   : > { %827 = vadd.xlane.f32.xlu1 %v786_v28  ;;  %v761_v35 = vmax.f32 %v735_v30, 0.0  ;;  %v791_v37 = vmul.f32 %v1290_v9, %v760_v32 }
 0x1f5   : > { %v759_v33 = vmax.f32 %v727_v31, 0.0  ;;  %v789_v34 = vmul.f32 %v1290_v9, %v758_v29 }
 0x1f6   : > { %v792_v38 = vmul.f32 %v1290_v9, %v761_v35 }
 0x1f7   : > { %833 = vadd.xlane.f32.xlu0 %v789_v34  ;;  %v790_v36 = vmul.f32 %v1290_v9, %v759_v33 }
 0x1f9   : > { %835 = vadd.xlane.f32.xlu1 %v790_v36 }
 0x1fb   : > { %837 = vadd.xlane.f32.xlu0 %v791_v37 }
 0x1fd   : > { %839 = vadd.xlane.f32.xlu1 %v792_v38 }
 0x25b   : > { %v798_v4 = vpop.xlane.xlu1 %797 }
 0x25c   : > { %v850_v40 = vadd.f32 %v1338_v39, %v798_v4  ;;  %v794_v9 = vpop.xlane.xlu0 %793 }
 0x25d   : > { %v848_v41 = vadd.f32 %v1338_v39, %v794_v9 }
 0x25e   : > { %875 = vst.msk [vmem:[%s1345_s14 + $0x10] sm:$0xff] %vm872_vm1, %v850_v40 }
 0x25f   : > { %873 = vst.msk [vmem:[%s1345_s14] sm:$0xff] %vm872_vm1, %v848_v41  ;;  %v800_v42 = vpop.xlane.xlu1 %799 }
 0x260   : > { %v851_v43 = vadd.f32 %v1338_v39, %v800_v42  ;;  %v796_v44 = vpop.xlane.xlu0 %795 }
 0x261   : > { %v849_v45 = vadd.f32 %v1338_v39, %v796_v44 }
 0x262   : > { %876 = vst.msk [vmem:[%s1345_s14 + $0x18] sm:$0xff] %vm872_vm1, %v851_v43 }
 0x263   : > { %874 = vst.msk [vmem:[%s1345_s14 + $0x8] sm:$0xff] %vm872_vm1, %v849_v45 }
 0x264   : > { %v806_v47 = vpop.xlane.xlu0 %805 }
 0x265   : > { %v854_v48 = vadd.f32 %v1338_v39, %v806_v47  ;;  %v808_v49 = vpop.xlane.xlu1 %807 }
 0x266   : > { %v855_v50 = vadd.f32 %v1338_v39, %v808_v49 }
 0x267   : > { %879 = vst.msk [vmem:[%s1345_s14 + $0x30] sm:$0xff] %vm872_vm1, %v854_v48 }
 0x268   : > { %880 = vst.msk [vmem:[%s1345_s14 + $0x38] sm:$0xff] %vm872_vm1, %v855_v50  ;;  %v802_v51 = vpop.xlane.xlu0 %801 }
 0x269   : > { %v852_v52 = vadd.f32 %v1338_v39, %v802_v51  ;;  %v804_v53 = vpop.xlane.xlu1 %803 }
 0x26a   : > { %v853_v54 = vadd.f32 %v1338_v39, %v804_v53 }
 0x26b   : > { %877 = vst.msk [vmem:[%s1345_s14 + $0x20] sm:$0xff] %vm872_vm1, %v852_v52 }
 0x26c   : > { %878 = vst.msk [vmem:[%s1345_s14 + $0x28] sm:$0xff] %vm872_vm1, %v853_v54  ;;  %v814_v55 = vpop.xlane.xlu0 %813 }
 0x26d   : > { %v858_v56 = vadd.f32 %v1338_v39, %v814_v55  ;;  %v816_v57 = vpop.xlane.xlu1 %815 }
 0x26e   : > { %v859_v58 = vadd.f32 %v1338_v39, %v816_v57 }
 0x26f   : > { %883 = vst.msk [vmem:[%s1345_s14 + $0x50] sm:$0xff] %vm872_vm1, %v858_v56 }
 0x270   : > { %884 = vst.msk [vmem:[%s1345_s14 + $0x58] sm:$0xff] %vm872_vm1, %v859_v58  ;;  %v810_v59 = vpop.xlane.xlu0 %809 }
 0x271   : > { %v856_v60 = vadd.f32 %v1338_v39, %v810_v59  ;;  %v812_v61 = vpop.xlane.xlu1 %811 }
 0x272   : > { %v857_v62 = vadd.f32 %v1338_v39, %v812_v61 }
 0x273   : > { %881 = vst.msk [vmem:[%s1345_s14 + $0x40] sm:$0xff] %vm872_vm1, %v856_v60 }
 0x274   : > { %882 = vst.msk [vmem:[%s1345_s14 + $0x48] sm:$0xff] %vm872_vm1, %v857_v62  ;;  %v822_v63 = vpop.xlane.xlu0 %821 }
 0x275   : > { %v862_v0 = vadd.f32 %v1338_v39, %v822_v63  ;;  %v824_v1 = vpop.xlane.xlu1 %823 }
 0x276   : > { %v863_v2 = vadd.f32 %v1338_v39, %v824_v1 }
 0x277   : > { %887 = vst.msk [vmem:[%s1345_s14 + $0x70] sm:$0xff] %vm872_vm1, %v862_v0 }
 0x278   : > { %888 = vst.msk [vmem:[%s1345_s14 + $0x78] sm:$0xff] %vm872_vm1, %v863_v2  ;;  %v818_v3 = vpop.xlane.xlu0 %817 }
 0x279   : > { %v860_v5 = vadd.f32 %v1338_v39, %v818_v3  ;;  %v820_v6 = vpop.xlane.xlu1 %819 }
 0x27a   : > { %v861_v7 = vadd.f32 %v1338_v39, %v820_v6 }
 0x27b   : > { %885 = vst.msk [vmem:[%s1345_s14 + $0x60] sm:$0xff] %vm872_vm1, %v860_v5 }
 0x27c   : > { %886 = vst.msk [vmem:[%s1345_s14 + $0x68] sm:$0xff] %vm872_vm1, %v861_v7  ;;  %v830_v8 = vpop.xlane.xlu0 %829 }
 0x27d   : > { %v866_v46 = vadd.f32 %v1338_v39, %v830_v8  ;;  %v832_v10 = vpop.xlane.xlu1 %831 }
 0x27e   : > { %v867_v11 = vadd.f32 %v1338_v39, %v832_v10 }
 0x27f   : > { %891 = vst.msk [vmem:[%s1345_s14 + $0x90] sm:$0xff] %vm872_vm1, %v866_v46 }
 0x280   : > { %892 = vst.msk [vmem:[%s1345_s14 + $0x98] sm:$0xff] %vm872_vm1, %v867_v11  ;;  %v826_v12 = vpop.xlane.xlu0 %825 }
 0x281   : > { %v864_v13 = vadd.f32 %v1338_v39, %v826_v12  ;;  %v828_v14 = vpop.xlane.xlu1 %827 }
 0x282   : > { %v865_v15 = vadd.f32 %v1338_v39, %v828_v14 }
 0x283   : > { %889 = vst.msk [vmem:[%s1345_s14 + $0x80] sm:$0xff] %vm872_vm1, %v864_v13 }
 0x284   : > { %890 = vst.msk [vmem:[%s1345_s14 + $0x88] sm:$0xff] %vm872_vm1, %v865_v15  ;;  %v834_v16 = vpop.xlane.xlu0 %833 }
 0x285   : > { %v868_v17 = vadd.f32 %v1338_v39, %v834_v16 }
 0x286   : > { %v836_v18 = vpop.xlane.xlu1 %835 }
 0x287   : > { %893 = vst.msk [vmem:[%s1345_s14 + $0xa0] sm:$0xff] %vm872_vm1, %v868_v17  ;;  %v869_v19 = vadd.f32 %v1338_v39, %v836_v18 }
 0x288   : > { %v838_v20 = vpop.xlane.xlu0 %837 }
 0x289   : > { %894 = vst.msk [vmem:[%s1345_s14 + $0xa8] sm:$0xff] %vm872_vm1, %v869_v19  ;;  %v870_v21 = vadd.f32 %v1338_v39, %v838_v20 }
 0x28a   : > { %v840_v22 = vpop.xlane.xlu1 %839 }
 0x28b   : > { %895 = vst.msk [vmem:[%s1345_s14 + $0xb0] sm:$0xff] %vm872_vm1, %v870_v21  ;;  %v871_v23 = vadd.f32 %v1338_v39, %v840_v22 }
 0x28d   : > { %896 = vst.msk [vmem:[%s1345_s14 + $0xb8] sm:$0xff] %vm872_vm1, %v871_v23 }
 0x28e PF: > { %s19_s26 = sadd.s32 1, %s1125_s26  }
 0x28f   : > { %p16_p4 = scmp.ge.s32.totalorder %s19_s26, 4  }
 0x291   :  { %18 = sbr.rel (!%p16_p4) target bundleno = 3 (0x3), region = 78 }

</bundles_post_ra>
